<compile_context>
chip_gen: v5e
topology: v5e:2x2
jax: 0.10.0
libtpu: 0.0.40
codegen_flags: <defaults>
</compile_context>

<pallas_src>
import jax
import jax.numpy as jnp
from jax.experimental import pallas as pl
from jax.experimental.pallas import tpu as pltpu


_SUB = 128            # lanes per in-kernel sub-chunk (keeps vreg working set small)
_MAX_P_BLOCK = 2048   # max P lanes DMA'd per grid step (VMEM use stays ~1 MiB)


def _round_up(x: int, m: int) -> int:
    return ((x + m - 1) // m) * m


def _choose_p_tile(p_pad128: int, max_lanes: int) -> int:
    """Pick a P tile (multiple of 128, <= max_lanes) minimizing mask-zeroed
    padding columns (~80 cyc each at TB=8/N=32) plus per-step overhead (~600 cyc)."""
    m = p_pad128 // 128
    t_max = max(1, min(m, max_lanes // 128))
    best_t, best_cost = 1, None
    for t in range(1, t_max + 1):
        waste = (-m) % t                    # dead 128-lane chunks from padding P to t*128
        n_tiles = (m + waste) // t          # grid steps along P
        cost = waste + 8 * n_tiles
        if best_cost is None or cost < best_cost or (cost == best_cost and t > best_t):
            best_t, best_cost = t, cost
    return best_t * 128


def _choose_b_tile(b: int) -> int:
    """Largest TB <= 8 dividing B while keeping >= 2 batch tiles when B >= 2,
    so the "parallel" batch axis can shard across both v7x TensorCores."""
    tb_max = min(8, max(1, -(-b // 2)))
    return max(t for t in range(1, tb_max + 1) if b % t == 0)


def _make_kernel(sub: int, single_p_tile: bool):
    def kernel(points_ref, nd_ref, c_ref, ns2_ref, out_ref):
        """One (batch-tile, P-tile) grid step.

        points_ref : (TB, D, TP)    points; D on sublanes, P on lanes
        nd_ref     : (TB, 1, TP)    not-dummy mask (0 on every padded column)
        c_ref      : (D, Npad, 1)   centers (transposed), N on sublanes
        ns2_ref    : (D, Npad, 1)   -(sharpness**2)
        out_ref    : (1, Npad, TB)  accumulator, resident across the P grid axis
        """
        TB, D, TP = points_ref.shape
        n_pad = c_ref.shape[1]
        n_sub = TP // sub

        if not single_p_tile:
            @pl.when(pl.program_id(1) == 0)
            def _init():
                out_ref[...] = jnp.zeros_like(out_ref)

        # Batch- and sub-chunk-invariant lane broadcasts, materialized ONCE per
        # grid step and reused across all TB rows and all n_sub sub-chunks.
        c_bc = [jnp.broadcast_to(c_ref[d], (n_pad, sub)) for d in range(D)]
        ns2_bc = [jnp.broadcast_to(ns2_ref[d], (n_pad, sub)) for d in range(D)]

        cols = []
        for b in range(TB):                          # static -> unrolled
            col = jnp.zeros((n_pad, 1), jnp.float32)
            for s in range(n_sub):                   # static -> unrolled sub-chunks
                sl = pl.ds(s * sub, sub)
                m_row = nd_ref[b, 0, sl].reshape(1, sub)
                nx = None
                for d in range(D):                   # D tiny -> unrolled
                    p_row = points_ref[b, d, sl].reshape(1, sub)
                    diff = c_bc[d] - p_row                       # (Npad, sub)  VPU
                    term = diff * diff * ns2_bc[d]               # VPU
                    nx = term if nx is None else nx + term
                val = jnp.exp(nx) * m_row                        # EUP + VPU
                col = col + jnp.sum(val, axis=1, keepdims=True)  # lane reduce (XLU)
            cols.append(col)

        acc = jnp.concatenate(cols, axis=1)                      # (Npad, TB)
        if single_p_tile:
            out_ref[0] = acc                                     # single store / step
        else:
            out_ref[0] = out_ref[0] + acc                        # one RMW / big step
    return kernel


def slayer_exponential_forward(points, not_dummy, centers, sharpness, *,
                               max_p_block=_MAX_P_BLOCK):
    """points: (B, P, D) f32, not_dummy: (B, P) f32, centers/sharpness: (N, D).
    Returns the module-equivalent output (B, N), squeezed like the torch forward."""
    points = points.astype(jnp.float32)
    not_dummy = not_dummy.astype(jnp.float32)
    centers = centers.astype(jnp.float32)
    sharpness = sharpness.astype(jnp.float32)

    B, P, D = points.shape
    N = centers.shape[0]

    # --- tiling --------------------------------------------------------------
    p_pad128 = _round_up(P, 128)
    TP = _choose_p_tile(p_pad128, max_p_block)
    P_pad = _round_up(p_pad128, TP)
    P_tiles = P_pad // TP
    TB = _choose_b_tile(B)
    B_tiles = B // TB
    N_pad = _round_up(N, 8)                   # N stays on sublanes (right for small N)
    # TODO(synk): for n_elements >= 128 flip the layout (N on lanes, P on
    # sublanes) for a lane-dense output and cheaper reduction.

    # --- wrapper-side prep (grid-invariant work hoisted out of the kernel) ---
    points_p = jnp.pad(points, ((0, 0), (0, P_pad - P), (0, 0)))
    nd_p = jnp.pad(not_dummy, ((0, 0), (0, P_pad - P)))          # padding stays 0
    centers_p = jnp.pad(centers, ((0, N_pad - N), (0, 0)))
    neg_sharp2 = jnp.pad(-jnp.square(sharpness), ((0, N_pad - N), (0, 0)))

    points_t = jnp.transpose(points_p, (0, 2, 1))                 # (B, D, P_pad)
    nd_t = nd_p[:, None, :]                                       # (B, 1, P_pad)
    centers_t = jnp.transpose(centers_p, (1, 0))[:, :, None]      # (D, N_pad, 1)
    neg_sharp2_t = jnp.transpose(neg_sharp2, (1, 0))[:, :, None]  # (D, N_pad, 1)

    grid_spec = pltpu.PrefetchScalarGridSpec(
        num_scalar_prefetch=0,
        grid=(B_tiles, P_tiles),                    # reduction (P) axis last
        in_specs=[
            pl.BlockSpec((TB, D, TP), lambda bi, pi: (bi, 0, pi)),     # points
            pl.BlockSpec((TB, 1, TP), lambda bi, pi: (bi, 0, pi)),     # mask
            pl.BlockSpec((D, N_pad, 1), lambda bi, pi: (0, 0, 0)),     # centers
            pl.BlockSpec((D, N_pad, 1), lambda bi, pi: (0, 0, 0)),     # -sharp^2
        ],
        out_specs=pl.BlockSpec((1, N_pad, TB), lambda bi, pi: (bi, 0, 0)),
    )

    cost = pl.CostEstimate(
        flops=B * P * N * (4 * D + 2),
        transcendentals=B * P * N,
        bytes_accessed=4 * (B * P * D + B * P + 2 * N * D + B * N),
    )

    out = pl.pallas_call(
        _make_kernel(_SUB, P_tiles == 1),
        out_shape=jax.ShapeDtypeStruct((B_tiles, N_pad, TB), jnp.float32),
        grid_spec=grid_spec,
        compiler_params=pltpu.CompilerParams(
            dimension_semantics=("parallel", "arbitrary")),
        cost_estimate=cost,
    )(points_t, nd_t, centers_t, neg_sharp2_t)

    # (B_tiles, N_pad, TB) -> (B, N); cheap layout plumbing done in plain XLA.
    out = jnp.transpose(out, (0, 2, 1)).reshape(B, N_pad)[:, :N]
    return jnp.squeeze(out)                       # mirrors `.squeeze()` in forward


def prepare_batch(list_of_pointsets, point_dim):
    """JAX glue mirroring chofer_torchex.prepare_batch: pads every multiset to
    the max number of points and builds a not-dummy mask."""
    batch_size = len(list_of_pointsets)
    max_points = max(int(x.shape[0]) for x in list_of_pointsets)
    if max_points == 0:
        max_points = 1
    padded, mask = [], []
    for ms in list_of_pointsets:
        n = int(ms.shape[0])
        pad = jnp.zeros((max_points, point_dim), jnp.float32)
        if n > 0:
            pad = pad.at[:n].set(ms.astype(jnp.float32))
        padded.append(pad)
        m = jnp.zeros((max_points,), jnp.float32)
        if n > 0:
            m = m.at[:n].set(1.0)
        mask.append(m)
    return jnp.stack(padded), jnp.stack(mask), max_points, batch_size


def _reference(points, not_dummy, centers, sharpness):
    # pure-JAX reference of SLayerExponential.forward (sanity check)
    diff = centers[None, :, None, :] - points[:, None, :, :]          # (B,N,P,D)
    x = jnp.sum(jnp.square(diff) * jnp.square(sharpness)[None, :, None, :], axis=3)
    x = jnp.exp(-x) * not_dummy[:, None, :]
    return jnp.sum(x, axis=2)


if __name__ == "__main__":
    key = jax.random.PRNGKey(0)
    n_elements = 32
    point_dim = 2

    k_c, k_p1, k_p2, k_mid, k_big = jax.random.split(key, 5)
    # deterministic "init" matching the module defaults
    centers = jax.random.uniform(k_c, (n_elements, point_dim), jnp.float32)   # torch.rand
    sharpness = 3.0 * jnp.ones((n_elements, point_dim), jnp.float32)          # ones * 3

    # 1) small multisets via prepare_batch (B=2, max_points=8, single 128-lane chunk)
    ms0 = jax.random.uniform(k_p1, (5, point_dim), jnp.float32)
    ms1 = jax.random.uniform(k_p2, (8, point_dim), jnp.float32)
    batch, not_dummy, max_points, batch_size = prepare_batch([ms0, ms1], point_dim)
    out = jax.block_until_ready(
        slayer_exponential_forward(batch, not_dummy, centers, sharpness))
    ref = _reference(batch, not_dummy, centers, sharpness)
    assert out.shape == (batch_size, n_elements), out.shape
    assert jnp.allclose(out, ref, atol=1e-5, rtol=1e-5)

    # 2) P=600 -> single 640-lane P tile (no padding waste), 5 sub-chunks, 3 batch tiles
    B2, P2 = 3, 600
    pts2 = jax.random.uniform(k_mid, (B2, P2, point_dim), jnp.float32)
    lens2 = jnp.array([600, 137, 5])
    nd2 = (jnp.arange(P2)[None, :] < lens2[:, None]).astype(jnp.float32)
    pts2 = pts2 * nd2[:, :, None]            # zero dummy points, like prepare_batch
    out2 = jax.block_until_ready(
        slayer_exponential_forward(pts2, nd2, centers, sharpness))
    ref2 = _reference(pts2, nd2, centers, sharpness)
    assert out2.shape == (B2, n_elements), out2.shape
    assert jnp.allclose(out2, ref2, atol=1e-4, rtol=1e-4)

    # 3) P=2345 -> two 1280-lane P tiles: exercises the resident accumulator
    #    (init + RMW) path and the single mask-zeroed padding sub-chunk.
    B3, P3 = 2, 2345
    pts3 = jax.random.uniform(k_big, (B3, P3, point_dim), jnp.float32)
    lens3 = jnp.array([2345, 1000])
    nd3 = (jnp.arange(P3)[None, :] < lens3[:, None]).astype(jnp.float32)
    pts3 = pts3 * nd3[:, :, None]
    out3 = jax.block_until_ready(
        slayer_exponential_forward(pts3, nd3, centers, sharpness))
    ref3 = _reference(pts3, nd3, centers, sharpness)
    assert out3.shape == (B3, n_elements), out3.shape
    assert jnp.allclose(out3, ref3, atol=1e-3, rtol=1e-4)

    print("KERNEL_OK")
</pallas_src>

<mosaic_0001>
module attributes {stable_mosaic.version = 11 : i64} {
  func.func @kernel(%arg0: i32, %arg1: i32, %arg2: memref<1x2x128xf32, #tpu.memory_space<vmem>>, %arg3: memref<1x1x128xf32, #tpu.memory_space<vmem>>, %arg4: memref<2x32x1xf32, #tpu.memory_space<vmem>>, %arg5: memref<2x32x1xf32, #tpu.memory_space<vmem>>, %arg6: memref<1x32x1xf32, #tpu.memory_space<vmem>>) attributes {dimension_semantics = [#tpu.dimension_semantics<parallel>, #tpu.dimension_semantics<arbitrary>], iteration_bounds = array<i64: 2, 1>, scalar_prefetch = 0 : i64, scratch_operands = 0 : i64, tpu.core_type = #tpu.core_type<tc>, window_params = [{transform_indices = @transform_0, window_bounds = array<i64: 1, 2, 128>}, {transform_indices = @transform_1, window_bounds = array<i64: 1, 1, 128>}, {pipeline_mode = #tpu.pipeline_mode<synchronous>, transform_indices = @transform_2, window_bounds = array<i64: 2, 32, 1>}, {pipeline_mode = #tpu.pipeline_mode<synchronous>, transform_indices = @transform_3, window_bounds = array<i64: 2, 32, 1>}, {transform_indices = @transform_4, window_bounds = array<i64: 1, 32, 1>}]} {
    %c0 = arith.constant 0 : index
    %c0_0 = arith.constant 0 : index
    %c0_1 = arith.constant 0 : index
    %0 = vector.load %arg4[%c0, %c0_0, %c0_1] : memref<2x32x1xf32, #tpu.memory_space<vmem>>, vector<1x32x1xf32>
    %1 = vector.shape_cast %0 : vector<1x32x1xf32> to vector<32x1xf32>
    %2 = vector.shape_cast %1 : vector<32x1xf32> to vector<32x1xf32>
    %3 = vector.broadcast %2 : vector<32x1xf32> to vector<32x128xf32>
    %c1 = arith.constant 1 : index
    %c0_2 = arith.constant 0 : index
    %c0_3 = arith.constant 0 : index
    %4 = vector.load %arg4[%c1, %c0_2, %c0_3] : memref<2x32x1xf32, #tpu.memory_space<vmem>>, vector<1x32x1xf32>
    %5 = vector.shape_cast %4 : vector<1x32x1xf32> to vector<32x1xf32>
    %6 = vector.shape_cast %5 : vector<32x1xf32> to vector<32x1xf32>
    %7 = vector.broadcast %6 : vector<32x1xf32> to vector<32x128xf32>
    %c0_4 = arith.constant 0 : index
    %c0_5 = arith.constant 0 : index
    %c0_6 = arith.constant 0 : index
    %8 = vector.load %arg5[%c0_4, %c0_5, %c0_6] : memref<2x32x1xf32, #tpu.memory_space<vmem>>, vector<1x32x1xf32>
    %9 = vector.shape_cast %8 : vector<1x32x1xf32> to vector<32x1xf32>
    %10 = vector.shape_cast %9 : vector<32x1xf32> to vector<32x1xf32>
    %11 = vector.broadcast %10 : vector<32x1xf32> to vector<32x128xf32>
    %c1_7 = arith.constant 1 : index
    %c0_8 = arith.constant 0 : index
    %c0_9 = arith.constant 0 : index
    %12 = vector.load %arg5[%c1_7, %c0_8, %c0_9] : memref<2x32x1xf32, #tpu.memory_space<vmem>>, vector<1x32x1xf32>
    %13 = vector.shape_cast %12 : vector<1x32x1xf32> to vector<32x1xf32>
    %14 = vector.shape_cast %13 : vector<32x1xf32> to vector<32x1xf32>
    %15 = vector.broadcast %14 : vector<32x1xf32> to vector<32x128xf32>
    %cst = arith.constant 0.000000e+00 : f32
    %16 = vector.broadcast %cst : f32 to vector<32x1xf32>
    %c0_10 = arith.constant 0 : index
    %c0_11 = arith.constant 0 : index
    %c0_12 = arith.constant 0 : index
    %17 = vector.load %arg3[%c0_10, %c0_11, %c0_12] : memref<1x1x128xf32, #tpu.memory_space<vmem>>, vector<1x1x128xf32>
    %18 = vector.shape_cast %17 : vector<1x1x128xf32> to vector<128xf32>
    %19 = vector.shape_cast %18 : vector<128xf32> to vector<1x128xf32>
    %c0_13 = arith.constant 0 : index
    %c0_14 = arith.constant 0 : index
    %c0_15 = arith.constant 0 : index
    %20 = vector.load %arg2[%c0_13, %c0_14, %c0_15] : memref<1x2x128xf32, #tpu.memory_space<vmem>>, vector<1x1x128xf32>
    %21 = vector.shape_cast %20 : vector<1x1x128xf32> to vector<128xf32>
    %22 = vector.shape_cast %21 : vector<128xf32> to vector<1x128xf32>
    %23 = vector.broadcast %22 : vector<1x128xf32> to vector<32x128xf32>
    %24 = arith.subf %3, %23 : vector<32x128xf32>
    %25 = arith.mulf %24, %24 : vector<32x128xf32>
    %26 = arith.mulf %25, %11 : vector<32x128xf32>
    %c0_16 = arith.constant 0 : index
    %c1_17 = arith.constant 1 : index
    %c0_18 = arith.constant 0 : index
    %27 = vector.load %arg2[%c0_16, %c1_17, %c0_18] : memref<1x2x128xf32, #tpu.memory_space<vmem>>, vector<1x1x128xf32>
    %28 = vector.shape_cast %27 : vector<1x1x128xf32> to vector<128xf32>
    %29 = vector.shape_cast %28 : vector<128xf32> to vector<1x128xf32>
    %30 = vector.broadcast %29 : vector<1x128xf32> to vector<32x128xf32>
    %31 = arith.subf %7, %30 : vector<32x128xf32>
    %32 = arith.mulf %31, %31 : vector<32x128xf32>
    %33 = arith.mulf %32, %15 : vector<32x128xf32>
    %34 = arith.addf %26, %33 : vector<32x128xf32>
    %35 = math.exp %34 : vector<32x128xf32>
    %36 = vector.broadcast %19 : vector<1x128xf32> to vector<32x128xf32>
    %37 = arith.mulf %35, %36 : vector<32x128xf32>
    %cst_19 = arith.constant dense<0.000000e+00> : vector<32xf32>
    %38 = vector.multi_reduction <add>, %37, %cst_19 [1] : vector<32x128xf32> to vector<32xf32>
    %39 = vector.shape_cast %38 : vector<32xf32> to vector<32x1xf32>
    %40 = arith.addf %16, %39 : vector<32x1xf32>
    %c0_20 = arith.constant 0 : index
    %c0_21 = arith.constant 0 : index
    %c0_22 = arith.constant 0 : index
    %41 = vector.load %arg6[%c0_20, %c0_21, %c0_22] : memref<1x32x1xf32, #tpu.memory_space<vmem>>, vector<1x32x1xf32>
    %42 = vector.shape_cast %41 : vector<1x32x1xf32> to vector<32x1xf32>
    %43 = vector.shape_cast %40 : vector<32x1xf32> to vector<1x32x1xf32>
    tpu.vector_store %arg6[%c0_20, %c0_21, %c0_22], %43 {strides = array<i32>} : memref<1x32x1xf32, #tpu.memory_space<vmem>>, vector<1x32x1xf32>,
    return
  }
  func.func @transform_0(%arg0: i32, %arg1: i32) -> (i32, i32, i32) {
    %c0_i32 = arith.constant 0 : i32
    %c0_i32_0 = arith.constant 0 : i32
    return %arg0, %c0_i32, %arg1 : i32, i32, i32
  }
  func.func @transform_1(%arg0: i32, %arg1: i32) -> (i32, i32, i32) {
    %c0_i32 = arith.constant 0 : i32
    %c0_i32_0 = arith.constant 0 : i32
    return %arg0, %c0_i32, %arg1 : i32, i32, i32
  }
  func.func @transform_2(%arg0: i32, %arg1: i32) -> (i32, i32, i32) {
    %c0_i32 = arith.constant 0 : i32
    %c0_i32_0 = arith.constant 0 : i32
    %c0_i32_1 = arith.constant 0 : i32
    %c0_i32_2 = arith.constant 0 : i32
    return %c0_i32, %c0_i32_0, %c0_i32_1 : i32, i32, i32
  }
  func.func @transform_3(%arg0: i32, %arg1: i32) -> (i32, i32, i32) {
    %c0_i32 = arith.constant 0 : i32
    %c0_i32_0 = arith.constant 0 : i32
    %c0_i32_1 = arith.constant 0 : i32
    %c0_i32_2 = arith.constant 0 : i32
    return %c0_i32, %c0_i32_0, %c0_i32_1 : i32, i32, i32
  }
  func.func @transform_4(%arg0: i32, %arg1: i32) -> (i32, i32, i32) {
    %c0_i32 = arith.constant 0 : i32
    %c0_i32_0 = arith.constant 0 : i32
    %c0_i32_1 = arith.constant 0 : i32
    return %arg0, %c0_i32, %c0_i32_0 : i32, i32, i32
  }
}

</mosaic_0001>

<bundles_post_ra>
// kernel: tpu_custom_call.1
= control target key start
LH: loop header
LB: loop body
LE: loop exit
PB: predicated region body
PF: predicated region fallthrough
CT: control target
= control target key end

     0   :  { %s592_s15 = smov 0   ;;  %s594_s16 = smov 0   ;;  %s690_s0 = inlined_call_operand.vmem [shape: f32[2,2,128], index: 0, kind: input, shape index: {}]   ;;  %s691_s1 = inlined_call_operand.vmem [shape: f32[2,1,128], index: 1, kind: input, shape index: {}]   ;;  %s692_s2 = inlined_call_operand.vmem [shape: f32[2,32,1], index: 2, kind: input, shape index: {}]   ;;  %s693_s3 = inlined_call_operand.vmem [shape: f32[2,32,1], index: 3, kind: input, shape index: {}]   ;;  %s694_s4 = inlined_call_operand.vmem [shape: f32[2,32,1], index: 4, kind: output, shape index: {}]  }
   0x1   :  { %s596_s17 = smov 0  }
   0x2 LB: > { %s26_s18 = sadd.s32 1, %s560_s16  ;;  %p488_p0 = scmp.ge.s32.totalorder %s564_s17, 1  ;;  %s564_s17 = sphi %s596_s17, %s14_s17   ;;  %s560_s16 = sphi %s594_s16, %s696_s16   ;;  %s556_s15 = sphi %s592_s15, %s695_s15  }
   0x3   : > { %p28_p1 = scmp.ge.s32.totalorder %s26_s18, 2  ;;  %p191_p2 = scmp.lt.s32.totalorder %s564_s17, 3 }
   0x5   : > { %s698_s18 = smov (%p28_p1, %s26_s18), 0  ;;  %p192_p3 = pnand %p488_p0, %p191_p2 }
   0x6   : > { %p225_p4 = scmp.lt.s32.totalorder (!%p192_p3), %s556_s15, 1 }
   0x7   : > { %195 = sbr.rel (%p192_p3) target bundleno = 302 (0x12e), region = 36 }
   0xc   : > { %v492_v0 = vld [vmem:[%s692_s2 + $0x20] sm:$0xff]  ;;  %v245_v1 = vld [vmem:[%s692_s2 + $0x10] sm:$0xff]  ;;  %v566_v3 = vmov 0   ;;  %s700_s15 = smov (!%p225_p4, %s556_s15), 1  ;;  %v493_v4 = vld [vmem:[%s692_s2 + $0x28] sm:$0xff]  ;;  %vm401_vm0 = vcmask 7168  }
   0xd   : > { %v243_v2 = vld [vmem:[%s692_s2] sm:$0xff]  ;;  %530 = vset.pattern.permute.xlu2 %v566_v3  ;;  %529 = vset.pattern.permute.xlu1 %v566_v3  ;;  %s489_s25 = sshll.u32 %s700_s15, 1  ;;  %v246_v5 = vld [vmem:[%s692_s2 + $0x18] sm:$0xff]  ;;  %v244_v6 = vld [vmem:[%s692_s2 + $0x8] sm:$0xff]  ;;  %s237_s27 = scalar_lea.vmem %s691_s1, %s700_s15 }
   0xe   : > { %528 = vset.pattern.permute.xlu0 %v566_v3  ;;  %274 = vperm.xlu2 %530, %v492_v0   ;;  %s625_s28 = scalar_lea.vmem %s690_s0, %s489_s25  ;;  %v292_v7 = vld [vmem:[%s693_s3] sm:$0xff]  ;;  %v495_v8 = vld [vmem:[%s692_s2 + $0x38] sm:$0xff]  ;;  %v494_v9 = vld [vmem:[%s692_s2 + $0x30] sm:$0xff]  ;;  %s502_s12 = sshll.u32 %s700_s15, 5 }
   0xf   : > { %259 = vperm.xlu1 %529, %v245_v1   ;;  %249 = vperm.xlu0 %528, %v243_v2   ;;  %v295_v10 = vld [vmem:[%s693_s3 + $0x18] sm:$0xff]  ;;  %v294_v11 = vld [vmem:[%s693_s3 + $0x10] sm:$0xff]  ;;  %v293_v12 = vld [vmem:[%s693_s3 + $0x8] sm:$0xff]  ;;  %s242_s19 = scalar_lea.vmem %s694_s4, %s502_s12 }
  0x10   : > { %v498_v13 = vld [vmem:[%s693_s3 + $0x30] sm:$0xff]  ;;  %v497_v14 = vld [vmem:[%s693_s3 + $0x28] sm:$0xff]  ;;  %v496_v15 = vld [vmem:[%s693_s3 + $0x20] sm:$0xff] }
  0x11   : > { %v499_v16 = vld [vmem:[%s693_s3 + $0x38] sm:$0xff]  ;;  %v531_v25 = vld [vmem:[%s625_s28 + $0x1] ss:$0 sm:$0xff]  ;;  %v532_v26 = vld [vmem:[%s625_s28] ss:$0 sm:$0xff] }
  0x12   : > { %v533_v55 = vld [vmem:[%s237_s27] ss:$0 sm:$0xff] }
  0x16   : > { %279 = vperm.xlu2 %530, %v493_v4  }
  0x17   : > { %264 = vperm.xlu1 %529, %v246_v5   ;;  %254 = vperm.xlu0 %528, %v244_v6  }
  0x1e   : > { %298 = vperm.xlu2 %530, %v292_v7  }
  0x1f   : > { %289 = vperm.xlu1 %529, %v495_v8   ;;  %284 = vperm.xlu0 %528, %v494_v9  }
  0x26   : > { %313 = vperm.xlu2 %530, %v295_v10  }
  0x27   : > { %308 = vperm.xlu1 %529, %v294_v11   ;;  %303 = vperm.xlu0 %528, %v293_v12  }
  0x2e   : > { %333 = vperm.xlu2 %530, %v498_v13  }
  0x2f   : > { %328 = vperm.xlu1 %529, %v497_v14   ;;  %323 = vperm.xlu0 %528, %v496_v15  }
  0x37   : > { %338 = vperm.xlu0 %528, %v499_v16  }
  0x68   : > { %v275_v17 = vpop.permute.xlu2 %274 }
  0x69   : > { %v358_v39 = vsub.f32 %v275_v17, %v531_v25 }
  0x6b   : > { %v362_v45 = vmul.f32 %v358_v39, %v358_v39 }
  0x70   : > { %v280_v18 = vpop.permute.xlu2 %279 }
  0x71   : > { %v359_v40 = vsub.f32 %v280_v18, %v531_v25 }
  0x73   : > { %v363_v46 = vmul.f32 %v359_v40, %v359_v40 }
  0x78   : > { %v299_v21 = vpop.permute.xlu2 %298 }
  0x80   : > { %v314_v24 = vpop.permute.xlu2 %313 }
  0x81   : > { %v260_v19 = vpop.permute.xlu1 %259  ;;  %v250_v20 = vpop.permute.xlu0 %249 }
  0x82   : > { %v346_v30 = vsub.f32 %v260_v19, %v532_v26  ;;  %v344_v34 = vsub.f32 %v250_v20, %v532_v26 }
  0x84   : > { %v350_v32 = vmul.f32 %v346_v30, %v346_v30  ;;  %v348_v43 = vmul.f32 %v344_v34, %v344_v34 }
  0x86   : > { %v352_v48 = vmul.f32 %v348_v43, %v299_v21 }
  0x88   : > { %v334_v33 = vpop.permute.xlu2 %333 }
  0x89   : > { %v265_v22 = vpop.permute.xlu1 %264  ;;  %v255_v23 = vpop.permute.xlu0 %254 }
  0x8a   : > { %v345_v41 = vsub.f32 %v255_v23, %v532_v26  ;;  %v347_v51 = vsub.f32 %v265_v22, %v532_v26 }
  0x8c   : > { %v349_v47 = vmul.f32 %v345_v41, %v345_v41  ;;  %v351_v60 = vmul.f32 %v347_v51, %v347_v51 }
  0x8e   : > { %v355_v2 = vmul.f32 %v351_v60, %v314_v24 }
  0x91   : > { %v290_v27 = vpop.permute.xlu1 %289  ;;  %v285_v28 = vpop.permute.xlu0 %284 }
  0x92   : > { %v360_v29 = vsub.f32 %v285_v28, %v531_v25  ;;  %v361_v56 = vsub.f32 %v290_v27, %v531_v25 }
  0x94   : > { %v364_v31 = vmul.f32 %v360_v29, %v360_v29  ;;  %v365_v0 = vmul.f32 %v361_v56, %v361_v56 }
  0x96   : > { %v368_v37 = vmul.f32 %v364_v31, %v334_v33 }
  0x99   : > { %v309_v35 = vpop.permute.xlu1 %308  ;;  %v304_v36 = vpop.permute.xlu0 %303 }
  0x9a   : > { %v354_v38 = vmul.f32 %v350_v32, %v309_v35  ;;  %v353_v52 = vmul.f32 %v349_v47, %v304_v36 }
  0x9c   : > { %v372_v42 = vadd.f32 %v368_v37, %v354_v38 }
  0x9e   : > { %v378_v44 = vmul.f32 1.442695, %v372_v42 }
  0xa0   : > { %534 = vpow2.f32 %v378_v44 }
  0xa1   : > { %v329_v49 = vpop.permute.xlu1 %328  ;;  %v324_v50 = vpop.permute.xlu0 %323 }
  0xa2   : > { %v367_v53 = vmul.f32 %v363_v46, %v329_v49  ;;  %v366_v54 = vmul.f32 %v362_v45, %v324_v50 }
  0xa4   : > { %v371_v57 = vadd.f32 %v367_v53, %v353_v52  ;;  %v370_v58 = vadd.f32 %v366_v54, %v352_v48 }
  0xa6   : > { %v535_v59 = vpop.eup %534  ;;  %v376_v61 = vmul.f32 1.442695, %v371_v57  ;;  %v374_v62 = vmul.f32 1.442695, %v370_v58 }
  0xa7   : > { %v387_v63 = vmul.f32 %v535_v59, %v533_v55 }
  0xa8   : > { %536 = vpow2.f32 %v376_v61 }
  0xa9   : > { %538 = vpow2.f32 %v374_v62  ;;  %v339_v1 = vpop.permute.xlu0 %338  ;;  %393 = vadd.xlane.f32.xlu0 %v387_v63 }
  0xaa   : > { %v369_v3 = vmul.f32 %v365_v0, %v339_v1 }
  0xac   : > { %v373_v4 = vadd.f32 %v369_v3, %v355_v2 }
  0xae   : > { %v537_v5 = vpop.eup %536  ;;  %v380_v6 = vmul.f32 1.442695, %v373_v4 }
  0xaf   : > { %v539_v7 = vpop.eup %538  ;;  %v386_v8 = vmul.f32 %v537_v5, %v533_v55 }
  0xb0   : > { %540 = vpow2.f32 %v380_v6  ;;  %v385_v9 = vmul.f32 %v539_v7, %v533_v55 }
  0xb1   : > { %391 = vadd.xlane.f32.xlu2 %v386_v8 }
  0xb2   : > { %389 = vadd.xlane.f32.xlu1 %v385_v9 }
  0xb6   : > { %v541_v10 = vpop.eup %540 }
  0xb7   : > { %v388_v11 = vmul.f32 %v541_v10, %v533_v55 }
  0xb9   : > { %395 = vadd.xlane.f32.xlu2 %v388_v11 }
 0x11c   : > { %v394_v12 = vpop.xlane.xlu0 %393 }
 0x11d   : > { %404 = vst.msk [vmem:[%s242_s19 + $0x10] sm:$0xff] %vm401_vm0, %v394_v12 }
 0x124   : > { %v392_v13 = vpop.xlane.xlu2 %391 }
 0x125   : > { %403 = vst.msk [vmem:[%s242_s19 + $0x8] sm:$0xff] %vm401_vm0, %v392_v13  ;;  %v390_v14 = vpop.xlane.xlu1 %389 }
 0x126   : > { %402 = vst.msk [vmem:[%s242_s19] sm:$0xff] %vm401_vm0, %v390_v14 }
 0x12c   : > { %v396_v15 = vpop.xlane.xlu2 %395 }
 0x12d   : > { %405 = vst.msk [vmem:[%s242_s19 + $0x18] sm:$0xff] %vm401_vm0, %v396_v15 }
 0x12e PF: > { %s14_s17 = sadd.s32 1, %s564_s17   ;;  %s695_s15 = smov %s560_s16 }
 0x12f   : > { %p11_p5 = scmp.ge.s32.totalorder %s14_s17, 4   ;;  %s696_s16 = smov %s698_s18 }
 0x131   :  { %13 = sbr.rel (!%p11_p5) target bundleno = 2 (0x2), region = 71 }

</bundles_post_ra>
